<compile_context>
chip_gen: v7x
topology: tpu7x:2x2x1
jax: 0.10.0
libtpu: 0.0.40
codegen_flags: <defaults>
</compile_context>

<pallas_src>
import jax
import jax.numpy as jnp
from jax.experimental import pallas as pl
from jax.experimental.pallas import tpu as pltpu

BN_EPS = 1e-5


# ---------------------------------------------------------------------------
# Kernel
# ---------------------------------------------------------------------------
def _make_double_conv_kernel(N, H, W, Cin, Cout):
    WCin = W * Cin            # lanes per row, block-1 input
    WCo = W * Cout            # lanes per row, hidden / output
    K1, K2 = 3 * WCin, 3 * WCo

    def kernel(x_ref, b1_ref, b2_ref, mrep_ref, g1_ref, be1_ref, g2_ref, be2_ref,
               out_ref, st1_ref, st2_ref):

        # Stage the three vertically-shifted copies of `src` ((N, H, WC) f32
        # value) side by side: st[n, h, :] = [src[h-1] | src[h] | src[h+1]],
        # with zero rows at the vertical boundaries (the conv's padding=1).
        def stage(st_ref, src, WC):
            st_ref[:, :, WC:2 * WC] = src                                    # ky = 1
            st_ref[:, 1:H, 0:WC] = src[:, 0:H - 1, :]                        # ky = 0
            st_ref[:, 0:1, 0:WC] = jnp.zeros((N, 1, WC), jnp.float32)
            st_ref[:, 0:H - 1, 2 * WC:3 * WC] = src[:, 1:H, :]               # ky = 2
            st_ref[:, H - 1:H, 2 * WC:3 * WC] = jnp.zeros((N, 1, WC), jnp.float32)

        # Train-mode BatchNorm (batch stats, biased var, gamma/beta of a fresh
        # module) + ReLU.  Stats path is f32; one merged matmul does the
        # reduce-over-width + broadcast-back for sum and sum-of-squares at once
        # (1/(N*H*W) is pre-folded into mrep).
        def bn_relu(z, gamma_ref, beta_ref):
            s1 = jnp.sum(z, axis=0, keepdims=True)                 # (1, W*Cout)
            s2 = jnp.sum(z * z, axis=0, keepdims=True)             # (1, W*Cout)
            stats = jnp.dot(jnp.concatenate([s1, s2], axis=0), mrep_ref[...],
                            preferred_element_type=jnp.float32)    # (2, W*Cout)
            mean = stats[0:1, :]
            var = stats[1:2, :] - mean * mean
            scale = gamma_ref[...] * jax.lax.rsqrt(var + BN_EPS)
            bias = beta_ref[...] - mean * scale
            return jnp.maximum(z * scale + bias, 0.0)

        # ---- block 1: SeparableConv2d -> BN -> ReLU  (one K=3*W*Cin matmul)
        stage(st1_ref, x_ref[...], WCin)
        lhs1 = st1_ref[...].reshape(N * H, K1).astype(jnp.bfloat16)
        z1 = jnp.dot(lhs1, b1_ref[...], preferred_element_type=jnp.float32)
        h1 = bn_relu(z1, g1_ref, be1_ref)                          # (N*H, W*Cout), f32, VMEM-resident

        # ---- block 2: SeparableConv2d -> BN -> ReLU  (one K=3*W*Cout matmul)
        stage(st2_ref, h1.reshape(N, H, WCo), WCo)
        lhs2 = st2_ref[...].reshape(N * H, K2).astype(jnp.bfloat16)
        z2 = jnp.dot(lhs2, b2_ref[...], preferred_element_type=jnp.float32)
        out_ref[...] = bn_relu(z2, g2_ref, be2_ref)                # lane-dense (32, 128)

    return kernel


def double_conv_forward(x_nchw, params):
    """DoubleConv forward. Input/output are NCHW (PyTorch convention)."""
    N, Cin, H, W = x_nchw.shape
    WCo = params["band2"].shape[1]
    Cout = WCo // W

    # Boundary layout glue only: NCHW -> (N, H, W*Cin) lane-dense rows.
    # TODO(synk): keep activations in this lane-dense layout between layers of
    # a larger network instead of transposing NCHW<->lane-dense per call.
    x_rows = jnp.transpose(x_nchw, (0, 2, 3, 1)).reshape(N, H, W * Cin)

    out = pl.pallas_call(
        _make_double_conv_kernel(N, H, W, Cin, Cout),
        out_shape=jax.ShapeDtypeStruct((N * H, WCo), jnp.float32),
        in_specs=[pl.BlockSpec(memory_space=pltpu.MemorySpace.VMEM)] * 8,
        out_specs=pl.BlockSpec(memory_space=pltpu.MemorySpace.VMEM),
        scratch_shapes=[
            pltpu.VMEM((N, H, 3 * W * Cin), jnp.float32),   # staged taps, block 1
            pltpu.VMEM((N, H, 3 * WCo), jnp.float32),       # staged taps, block 2
        ],
    )(x_rows, params["band1"], params["band2"], params["mrep"],
      params["g1r"], params["b1r"], params["g2r"], params["b2r"])

    return jnp.transpose(out.reshape(N, H, W, Cout), (0, 3, 1, 2))


# ---------------------------------------------------------------------------
# Parameter construction / layout transforms (plain JAX, one-time, tiny)
# ---------------------------------------------------------------------------
def init_torch_params(key, cin, cout):
    """Deterministic PyTorch-layout parameters for DoubleConv(cin, cout)."""
    k1, k2, k3, k4 = jax.random.split(key, 4)
    return {
        "dw1_pt": jax.random.normal(k1, (cin, 1, 3, 3), jnp.float32) * 0.2,
        "pw1_pt": jax.random.normal(k2, (cout, cin, 1, 1), jnp.float32) * 0.2,
        "dw2_pt": jax.random.normal(k3, (cout, 1, 3, 3), jnp.float32) * 0.2,
        "pw2_pt": jax.random.normal(k4, (cout, cout, 1, 1), jnp.float32) * 0.2,
        "g1": jnp.ones((cout,), jnp.float32), "b1": jnp.zeros((cout,), jnp.float32),
        "g2": jnp.ones((cout,), jnp.float32), "b2": jnp.zeros((cout,), jnp.float32),
    }


def _composite_weight(dw_pt, pw_pt):
    # (Cin,1,3,3) depthwise * (Cout,Cin,1,1) pointwise -> (3,3,Cin,Cout)
    return jnp.einsum("ihw,oi->hwio", dw_pt[:, 0], pw_pt[:, :, 0, 0])


def _band_matrix(wc, W):
    """Fold the 3x3 composite conv along width into ONE banded weight matrix of
    shape (3*W*Cin, W*Cout): rows ordered (ky, wi, ci), columns (wo, co), to
    match the kernel's staged LHS.  Horizontal zero padding of the conv is
    implicit in the band structure (out-of-range taps are 0)."""
    _, _, Cin, Cout = wc.shape
    wi = jnp.arange(W)[:, None]
    wo = jnp.arange(W)[None, :]
    kx = wi - wo + 1                      # input col wi feeds output wo at tap kx
    valid = ((kx >= 0) & (kx <= 2)).astype(wc.dtype)
    kxc = jnp.clip(kx, 0, 2)
    bands = []
    for ky in range(3):
        b = wc[ky][kxc] * valid[:, :, None, None]             # (W, W, Cin, Cout)
        bands.append(jnp.transpose(b, (0, 2, 1, 3)).reshape(W * Cin, W * Cout))
    return jnp.concatenate(bands, axis=0)                     # (3*W*Cin, W*Cout)


def prepare_kernel_params(tp, N, H, W):
    """One-time weight layout transform into the kernel's lane-dense layout.
    Conv weights -> bf16 (MXU native, halves weight DMA); BN path stays f32."""
    cout = tp["g1"].shape[0]
    lanes = jnp.arange(W * cout)
    mrep = (lanes[:, None] % cout == lanes[None, :] % cout).astype(jnp.float32)
    mrep = mrep * (1.0 / float(N * H * W))   # fold BN's 1/count into the reduce matrix

    def rep(v):  # per-channel vector -> (1, W*Cout) lane vector (w-major, c-minor)
        return jnp.tile(v, W).reshape(1, W * cout)

    return {
        "band1": _band_matrix(_composite_weight(tp["dw1_pt"], tp["pw1_pt"]),
                              W).astype(jnp.bfloat16),
        "band2": _band_matrix(_composite_weight(tp["dw2_pt"], tp["pw2_pt"]),
                              W).astype(jnp.bfloat16),
        "mrep": mrep,
        "g1r": rep(tp["g1"]), "b1r": rep(tp["b1"]),
        "g2r": rep(tp["g2"]), "b2r": rep(tp["b2"]),
    }


# ---------------------------------------------------------------------------
# Pure-JAX reference (XLA convs) of the PyTorch forward, for validation
# ---------------------------------------------------------------------------
def reference_forward(x_nchw, pt):
    def block(x, dw_pt, pw_pt, gamma, beta):
        y = jax.lax.conv_general_dilated(
            x, dw_pt, window_strides=(1, 1), padding=((1, 1), (1, 1)),
            feature_group_count=x.shape[1],
            dimension_numbers=("NCHW", "OIHW", "NCHW"))
        y = jax.lax.conv_general_dilated(
            y, pw_pt, window_strides=(1, 1), padding="VALID",
            dimension_numbers=("NCHW", "OIHW", "NCHW"))
        mean = jnp.mean(y, axis=(0, 2, 3), keepdims=True)
        var = jnp.mean((y - mean) ** 2, axis=(0, 2, 3), keepdims=True)
        y = (y - mean) / jnp.sqrt(var + BN_EPS)
        y = y * gamma.reshape(1, -1, 1, 1) + beta.reshape(1, -1, 1, 1)
        return jnp.maximum(y, 0.0)

    y = block(x_nchw, pt["dw1_pt"], pt["pw1_pt"], pt["g1"], pt["b1"])
    y = block(y, pt["dw2_pt"], pt["pw2_pt"], pt["g2"], pt["b2"])
    return y


if __name__ == "__main__":
    key = jax.random.PRNGKey(0)
    kx, kp = jax.random.split(key)

    N, Cin, H, W = 2, 4, 16, 16            # small NCHW input, DoubleConv(4, 8)
    Cout = 8

    x = jax.random.normal(kx, (N, Cin, H, W), jnp.float32)
    torch_params = init_torch_params(kp, Cin, Cout)
    kernel_params = prepare_kernel_params(torch_params, N, H, W)

    out = jax.jit(double_conv_forward)(x, kernel_params)
    out = jax.block_until_ready(out)
    assert out.shape == (N, Cout, H, W), out.shape

    ref = reference_forward(x, torch_params)
    max_err = float(jnp.max(jnp.abs(out - ref)))
    # bf16 conv operands (f32 reference) + BatchNorm's rsqrt amplification ->
    # looser tolerance than the f32-only kernel (expected max |err| ~1e-2 here).
    assert max_err < 5e-2, f"mismatch vs reference, max abs err = {max_err}"

    print("KERNEL_OK")
</pallas_src>

<mosaic_0001>
module attributes {stable_mosaic.version = 11 : i64} {
  func.func @kernel(%arg0: memref<2x16x64xf32, #tpu.memory_space<vmem>>, %arg1: memref<192x128xbf16, #tpu.memory_space<vmem>>, %arg2: memref<384x128xbf16, #tpu.memory_space<vmem>>, %arg3: memref<128x128xf32, #tpu.memory_space<vmem>>, %arg4: memref<1x128xf32, #tpu.memory_space<vmem>>, %arg5: memref<1x128xf32, #tpu.memory_space<vmem>>, %arg6: memref<1x128xf32, #tpu.memory_space<vmem>>, %arg7: memref<1x128xf32, #tpu.memory_space<vmem>>, %arg8: memref<32x128xf32, #tpu.memory_space<vmem>>, %arg9: memref<2x16x192xf32, #tpu.memory_space<vmem>>, %arg10: memref<2x16x384xf32, #tpu.memory_space<vmem>>) attributes {dimension_semantics = [], scalar_prefetch = 0 : i64, scratch_operands = 2 : i64, tpu.core_type = #tpu.core_type<tc>} {
    %c0 = arith.constant 0 : index
    %c0_0 = arith.constant 0 : index
    %c0_1 = arith.constant 0 : index
    %0 = vector.load %arg0[%c0, %c0_0, %c0_1] : memref<2x16x64xf32, #tpu.memory_space<vmem>>, vector<2x16x64xf32>
    %c0_2 = arith.constant 0 : index
    %c0_3 = arith.constant 0 : index
    %c64 = arith.constant 64 : index
    %1 = vector.load %arg9[%c0_2, %c0_3, %c64] : memref<2x16x192xf32, #tpu.memory_space<vmem>>, vector<2x16x64xf32>
    tpu.vector_store %arg9[%c0_2, %c0_3, %c64], %0 {strides = array<i32>} : memref<2x16x192xf32, #tpu.memory_space<vmem>>, vector<2x16x64xf32>,
    %2 = vector.extract_strided_slice %0 {offsets = [0, 0, 0], sizes = [2, 15, 64], strides = [1, 1, 1]} : vector<2x16x64xf32> to vector<2x15x64xf32>
    %c0_4 = arith.constant 0 : index
    %c1 = arith.constant 1 : index
    %c0_5 = arith.constant 0 : index
    %3 = vector.load %arg9[%c0_4, %c1, %c0_5] : memref<2x16x192xf32, #tpu.memory_space<vmem>>, vector<2x15x64xf32>
    tpu.vector_store %arg9[%c0_4, %c1, %c0_5], %2 {strides = array<i32>} : memref<2x16x192xf32, #tpu.memory_space<vmem>>, vector<2x15x64xf32>,
    %cst = arith.constant 0.000000e+00 : f32
    %4 = vector.broadcast %cst : f32 to vector<2x1x64xf32>
    %c0_6 = arith.constant 0 : index
    %c0_7 = arith.constant 0 : index
    %c0_8 = arith.constant 0 : index
    %5 = vector.load %arg9[%c0_6, %c0_7, %c0_8] : memref<2x16x192xf32, #tpu.memory_space<vmem>>, vector<2x1x64xf32>
    tpu.vector_store %arg9[%c0_6, %c0_7, %c0_8], %4 {strides = array<i32>} : memref<2x16x192xf32, #tpu.memory_space<vmem>>, vector<2x1x64xf32>,
    %6 = vector.extract_strided_slice %0 {offsets = [0, 1, 0], sizes = [2, 15, 64], strides = [1, 1, 1]} : vector<2x16x64xf32> to vector<2x15x64xf32>
    %c0_9 = arith.constant 0 : index
    %c0_10 = arith.constant 0 : index
    %c128 = arith.constant 128 : index
    %7 = vector.load %arg9[%c0_9, %c0_10, %c128] : memref<2x16x192xf32, #tpu.memory_space<vmem>>, vector<2x15x64xf32>
    tpu.vector_store %arg9[%c0_9, %c0_10, %c128], %6 {strides = array<i32>} : memref<2x16x192xf32, #tpu.memory_space<vmem>>, vector<2x15x64xf32>,
    %cst_11 = arith.constant 0.000000e+00 : f32
    %8 = vector.broadcast %cst_11 : f32 to vector<2x1x64xf32>
    %c0_12 = arith.constant 0 : index
    %c15 = arith.constant 15 : index
    %c128_13 = arith.constant 128 : index
    %9 = vector.load %arg9[%c0_12, %c15, %c128_13] : memref<2x16x192xf32, #tpu.memory_space<vmem>>, vector<2x1x64xf32>
    tpu.vector_store %arg9[%c0_12, %c15, %c128_13], %8 {strides = array<i32>} : memref<2x16x192xf32, #tpu.memory_space<vmem>>, vector<2x1x64xf32>,
    %c0_14 = arith.constant 0 : index
    %c0_15 = arith.constant 0 : index
    %c0_16 = arith.constant 0 : index
    %10 = vector.load %arg9[%c0_14, %c0_15, %c0_16] : memref<2x16x192xf32, #tpu.memory_space<vmem>>, vector<2x16x192xf32>
    %11 = vector.shape_cast %10 : vector<2x16x192xf32> to vector<32x192xf32>
    %12 = arith.truncf %11 : vector<32x192xf32> to vector<32x192xbf16>
    %c0_17 = arith.constant 0 : index
    %c0_18 = arith.constant 0 : index
    %13 = vector.load %arg1[%c0_17, %c0_18] : memref<192x128xbf16, #tpu.memory_space<vmem>>, vector<192x128xbf16>
    %cst_19 = arith.constant dense<0.000000e+00> : vector<32x128xf32>
    %14 = tpu.matmul %12, %13, %cst_19 {dimension_numbers = #tpu.dot_dimension_numbers<[1], [0], [0], [1], [0, 0, 1, 1], [], []>} : vector<32x192xbf16>, vector<192x128xbf16>, vector<32x128xf32> -> vector<32x128xf32>
    %cst_20 = arith.constant dense<0.000000e+00> : vector<128xf32>
    %15 = vector.multi_reduction <add>, %14, %cst_20 [0] : vector<32x128xf32> to vector<128xf32>
    %16 = vector.shape_cast %15 : vector<128xf32> to vector<1x128xf32>
    %17 = arith.mulf %14, %14 : vector<32x128xf32>
    %cst_21 = arith.constant dense<0.000000e+00> : vector<128xf32>
    %18 = vector.multi_reduction <add>, %17, %cst_21 [0] : vector<32x128xf32> to vector<128xf32>
    %19 = vector.shape_cast %18 : vector<128xf32> to vector<1x128xf32>
    %20 = tpu.concatenate %16, %19 in 0 : vector<1x128xf32>, vector<1x128xf32> -> vector<2x128xf32>
    %c0_22 = arith.constant 0 : index
    %c0_23 = arith.constant 0 : index
    %21 = vector.load %arg3[%c0_22, %c0_23] : memref<128x128xf32, #tpu.memory_space<vmem>>, vector<128x128xf32>
    %cst_24 = arith.constant dense<0.000000e+00> : vector<2x128xf32>
    %22 = tpu.matmul %20, %21, %cst_24 {dimension_numbers = #tpu.dot_dimension_numbers<[1], [0], [0], [1], [0, 0, 1, 1], [], []>} : vector<2x128xf32>, vector<128x128xf32>, vector<2x128xf32> -> vector<2x128xf32>
    %23 = vector.extract_strided_slice %22 {offsets = [0, 0], sizes = [1, 128], strides = [1, 1]} : vector<2x128xf32> to vector<1x128xf32>
    %24 = vector.extract_strided_slice %22 {offsets = [1, 0], sizes = [1, 128], strides = [1, 1]} : vector<2x128xf32> to vector<1x128xf32>
    %25 = arith.mulf %23, %23 : vector<1x128xf32>
    %26 = arith.subf %24, %25 : vector<1x128xf32>
    %c0_25 = arith.constant 0 : index
    %c0_26 = arith.constant 0 : index
    %27 = vector.load %arg4[%c0_25, %c0_26] : memref<1x128xf32, #tpu.memory_space<vmem>>, vector<1x128xf32>
    %cst_27 = arith.constant 9.99999974E-6 : f32
    %28 = vector.broadcast %cst_27 : f32 to vector<1x128xf32>
    %29 = arith.addf %26, %28 : vector<1x128xf32>
    %30 = math.rsqrt %29 : vector<1x128xf32>
    %31 = arith.mulf %27, %30 : vector<1x128xf32>
    %c0_28 = arith.constant 0 : index
    %c0_29 = arith.constant 0 : index
    %32 = vector.load %arg5[%c0_28, %c0_29] : memref<1x128xf32, #tpu.memory_space<vmem>>, vector<1x128xf32>
    %33 = arith.mulf %23, %31 : vector<1x128xf32>
    %34 = arith.subf %32, %33 : vector<1x128xf32>
    %35 = vector.broadcast %31 : vector<1x128xf32> to vector<32x128xf32>
    %36 = arith.mulf %14, %35 : vector<32x128xf32>
    %37 = vector.broadcast %34 : vector<1x128xf32> to vector<32x128xf32>
    %38 = arith.addf %36, %37 : vector<32x128xf32>
    %cst_30 = arith.constant 0.000000e+00 : f32
    %39 = vector.broadcast %cst_30 : f32 to vector<32x128xf32>
    %40 = arith.maximumf %38, %39 : vector<32x128xf32>
    %41 = vector.shape_cast %40 : vector<32x128xf32> to vector<2x16x128xf32>
    %c0_31 = arith.constant 0 : index
    %c0_32 = arith.constant 0 : index
    %c128_33 = arith.constant 128 : index
    %42 = vector.load %arg10[%c0_31, %c0_32, %c128_33] : memref<2x16x384xf32, #tpu.memory_space<vmem>>, vector<2x16x128xf32>
    tpu.vector_store %arg10[%c0_31, %c0_32, %c128_33], %41 {strides = array<i32>} : memref<2x16x384xf32, #tpu.memory_space<vmem>>, vector<2x16x128xf32>,
    %43 = vector.extract_strided_slice %41 {offsets = [0, 0, 0], sizes = [2, 15, 128], strides = [1, 1, 1]} : vector<2x16x128xf32> to vector<2x15x128xf32>
    %c0_34 = arith.constant 0 : index
    %c1_35 = arith.constant 1 : index
    %c0_36 = arith.constant 0 : index
    %44 = vector.load %arg10[%c0_34, %c1_35, %c0_36] : memref<2x16x384xf32, #tpu.memory_space<vmem>>, vector<2x15x128xf32>
    tpu.vector_store %arg10[%c0_34, %c1_35, %c0_36], %43 {strides = array<i32>} : memref<2x16x384xf32, #tpu.memory_space<vmem>>, vector<2x15x128xf32>,
    %cst_37 = arith.constant 0.000000e+00 : f32
    %45 = vector.broadcast %cst_37 : f32 to vector<2x1x128xf32>
    %c0_38 = arith.constant 0 : index
    %c0_39 = arith.constant 0 : index
    %c0_40 = arith.constant 0 : index
    %46 = vector.load %arg10[%c0_38, %c0_39, %c0_40] : memref<2x16x384xf32, #tpu.memory_space<vmem>>, vector<2x1x128xf32>
    tpu.vector_store %arg10[%c0_38, %c0_39, %c0_40], %45 {strides = array<i32>} : memref<2x16x384xf32, #tpu.memory_space<vmem>>, vector<2x1x128xf32>,
    %47 = vector.extract_strided_slice %41 {offsets = [0, 1, 0], sizes = [2, 15, 128], strides = [1, 1, 1]} : vector<2x16x128xf32> to vector<2x15x128xf32>
    %c0_41 = arith.constant 0 : index
    %c0_42 = arith.constant 0 : index
    %c256 = arith.constant 256 : index
    %48 = vector.load %arg10[%c0_41, %c0_42, %c256] : memref<2x16x384xf32, #tpu.memory_space<vmem>>, vector<2x15x128xf32>
    tpu.vector_store %arg10[%c0_41, %c0_42, %c256], %47 {strides = array<i32>} : memref<2x16x384xf32, #tpu.memory_space<vmem>>, vector<2x15x128xf32>,
    %cst_43 = arith.constant 0.000000e+00 : f32
    %49 = vector.broadcast %cst_43 : f32 to vector<2x1x128xf32>
    %c0_44 = arith.constant 0 : index
    %c15_45 = arith.constant 15 : index
    %c256_46 = arith.constant 256 : index
    %50 = vector.load %arg10[%c0_44, %c15_45, %c256_46] : memref<2x16x384xf32, #tpu.memory_space<vmem>>, vector<2x1x128xf32>
    tpu.vector_store %arg10[%c0_44, %c15_45, %c256_46], %49 {strides = array<i32>} : memref<2x16x384xf32, #tpu.memory_space<vmem>>, vector<2x1x128xf32>,
    %c0_47 = arith.constant 0 : index
    %c0_48 = arith.constant 0 : index
    %c0_49 = arith.constant 0 : index
    %51 = vector.load %arg10[%c0_47, %c0_48, %c0_49] : memref<2x16x384xf32, #tpu.memory_space<vmem>>, vector<2x16x384xf32>
    %52 = vector.shape_cast %51 : vector<2x16x384xf32> to vector<32x384xf32>
    %53 = arith.truncf %52 : vector<32x384xf32> to vector<32x384xbf16>
    %c0_50 = arith.constant 0 : index
    %c0_51 = arith.constant 0 : index
    %54 = vector.load %arg2[%c0_50, %c0_51] : memref<384x128xbf16, #tpu.memory_space<vmem>>, vector<384x128xbf16>
    %cst_52 = arith.constant dense<0.000000e+00> : vector<32x128xf32>
    %55 = tpu.matmul %53, %54, %cst_52 {dimension_numbers = #tpu.dot_dimension_numbers<[1], [0], [0], [1], [0, 0, 1, 1], [], []>} : vector<32x384xbf16>, vector<384x128xbf16>, vector<32x128xf32> -> vector<32x128xf32>
    %cst_53 = arith.constant dense<0.000000e+00> : vector<128xf32>
    %56 = vector.multi_reduction <add>, %55, %cst_53 [0] : vector<32x128xf32> to vector<128xf32>
    %57 = vector.shape_cast %56 : vector<128xf32> to vector<1x128xf32>
    %58 = arith.mulf %55, %55 : vector<32x128xf32>
    %cst_54 = arith.constant dense<0.000000e+00> : vector<128xf32>
    %59 = vector.multi_reduction <add>, %58, %cst_54 [0] : vector<32x128xf32> to vector<128xf32>
    %60 = vector.shape_cast %59 : vector<128xf32> to vector<1x128xf32>
    %61 = tpu.concatenate %57, %60 in 0 : vector<1x128xf32>, vector<1x128xf32> -> vector<2x128xf32>
    %c0_55 = arith.constant 0 : index
    %c0_56 = arith.constant 0 : index
    %62 = vector.load %arg3[%c0_55, %c0_56] : memref<128x128xf32, #tpu.memory_space<vmem>>, vector<128x128xf32>
    %cst_57 = arith.constant dense<0.000000e+00> : vector<2x128xf32>
    %63 = tpu.matmul %61, %62, %cst_57 {dimension_numbers = #tpu.dot_dimension_numbers<[1], [0], [0], [1], [0, 0, 1, 1], [], []>} : vector<2x128xf32>, vector<128x128xf32>, vector<2x128xf32> -> vector<2x128xf32>
    %64 = vector.extract_strided_slice %63 {offsets = [0, 0], sizes = [1, 128], strides = [1, 1]} : vector<2x128xf32> to vector<1x128xf32>
    %65 = vector.extract_strided_slice %63 {offsets = [1, 0], sizes = [1, 128], strides = [1, 1]} : vector<2x128xf32> to vector<1x128xf32>
    %66 = arith.mulf %64, %64 : vector<1x128xf32>
    %67 = arith.subf %65, %66 : vector<1x128xf32>
    %c0_58 = arith.constant 0 : index
    %c0_59 = arith.constant 0 : index
    %68 = vector.load %arg6[%c0_58, %c0_59] : memref<1x128xf32, #tpu.memory_space<vmem>>, vector<1x128xf32>
    %cst_60 = arith.constant 9.99999974E-6 : f32
    %69 = vector.broadcast %cst_60 : f32 to vector<1x128xf32>
    %70 = arith.addf %67, %69 : vector<1x128xf32>
    %71 = math.rsqrt %70 : vector<1x128xf32>
    %72 = arith.mulf %68, %71 : vector<1x128xf32>
    %c0_61 = arith.constant 0 : index
    %c0_62 = arith.constant 0 : index
    %73 = vector.load %arg7[%c0_61, %c0_62] : memref<1x128xf32, #tpu.memory_space<vmem>>, vector<1x128xf32>
    %74 = arith.mulf %64, %72 : vector<1x128xf32>
    %75 = arith.subf %73, %74 : vector<1x128xf32>
    %76 = vector.broadcast %72 : vector<1x128xf32> to vector<32x128xf32>
    %77 = arith.mulf %55, %76 : vector<32x128xf32>
    %78 = vector.broadcast %75 : vector<1x128xf32> to vector<32x128xf32>
    %79 = arith.addf %77, %78 : vector<32x128xf32>
    %cst_63 = arith.constant 0.000000e+00 : f32
    %80 = vector.broadcast %cst_63 : f32 to vector<32x128xf32>
    %81 = arith.maximumf %79, %80 : vector<32x128xf32>
    %c0_64 = arith.constant 0 : index
    %c0_65 = arith.constant 0 : index
    %82 = vector.load %arg8[%c0_64, %c0_65] : memref<32x128xf32, #tpu.memory_space<vmem>>, vector<32x128xf32>
    tpu.vector_store %arg8[%c0_64, %c0_65], %81 {strides = array<i32>} : memref<32x128xf32, #tpu.memory_space<vmem>>, vector<32x128xf32>,
    return
  }
}

</mosaic_0001>

<bundles_post_ra>
// kernel: double_conv_forward.1
= control target key start
LH: loop header
LB: loop body
LE: loop exit
PB: predicated region body
PF: predicated region fallthrough
CT: control target
= control target key end

     0   :  { %vm75_vm0 = vcmask 1046528   ;;  %vm87_vm1 = vcmask 522240   ;;  %v1230_v3 = vmov 0   ;;  %vm72_vm2 = vcmask 516096   ;;  %s1231_s11 = smov 64   ;;  %s1621_s0 = inlined_call_operand.vmem [shape: f32[2,16,64], index: 0, kind: input, shape index: {}]   ;;  %s1622_s1 = inlined_call_operand.vmem [shape: bf16[192,128], index: 1, kind: input, shape index: {}]   ;;  %s1623_s3 = inlined_call_operand.vmem [shape: f32[128,128], index: 3, kind: input, shape index: {}]   ;;  %s1624_s2 = inlined_call_operand.vmem [shape: bf16[384,128], index: 2, kind: input, shape index: {}]   ;;  %s1625_s4 = inlined_call_operand.vmem [shape: f32[1,128], index: 4, kind: input, shape index: {}]   ;;  %s1626_s5 = inlined_call_operand.vmem [shape: f32[1,128], index: 5, kind: input, shape index: {}]   ;;  %s1627_s6 = inlined_call_operand.vmem [shape: f32[1,128], index: 6, kind: input, shape index: {}]   ;;  %s1628_s7 = inlined_call_operand.vmem [shape: f32[1,128], index: 7, kind: input, shape index: {}]   ;;  %s1629_s8 = inlined_call_operand.vmem [shape: f32[32,128], index: 8, kind: output, shape index: {}]  }
   0x1   :  { %v1284_v0 = vld [vmem:[%s1621_s0] sm:$0xff]  ;;  %v31_v1 = vld [vmem:[%s1621_s0 + $0x8] sm:$0xff]  ;;  %v1292_v2 = vld [vmem:[%s1621_s0 + $0x10] sm:$0xff]  ;;  %207 = vmatprep.subr.bf16.mxu0 %v1230_v3  ;;  %v1232_v10 = vmov 0.0   ;;  %vm55_vm3 = vcmask 1040384   ;;  %vm68_vm4 = vcmask 523264  }
   0x2   :  { %38 = vrot.lane.b32.xlu0 %v1284_v0, %s1231_s11  ;;  %v56_v4 = vrot.slane %v1284_v0, 7  ;;  %v76_v5 = vrot.slane %v1284_v0, 1  ;;  %v57_v6 = vrot.slane %v31_v1, 7  ;;  %v77_v7 = vrot.slane %v31_v1, 1  ;;  %42 = vrot.lane.b32.xlu1 %v1292_v2, %s1231_s11  ;;  %v33_v8 = vld [vmem:[%s1621_s0 + $0x18] sm:$0xff]  ;;  %v1190_v9 = vld [vmem:[%s1622_s1] sm:$0xff]  }
   0x3   :  { %91 = vst.msk [vmem:[#allocation2 + $0x1f] sm:$0x1] %vm72_vm2, %v1232_v10  ;;  %92 = vst.msk [vmem:[#allocation2 + $0x3f] sm:$0x1] %vm72_vm2, %v1232_v10  ;;  %v59_v11 = vrot.slane %v1292_v2, 7  ;;  %v79_v12 = vrot.slane %v1292_v2, 1  ;;  %208 = vmatpush1.bf16.msra.mxu0 %v1190_v9 }
   0x4   :  { %440 = vst [vmem:[#allocation3] sm:$0x1] %v1232_v10  ;;  %441 = vst [vmem:[#allocation3 + $0x30] sm:$0x1] %v1232_v10  ;;  %v60_v13 = vrot.slane %v33_v8, 7  ;;  %v80_v14 = vrot.slane %v33_v8, 1  ;;  %v78_v15 = vsel %vm75_vm0, %v76_v5, %v77_v7  ;;  %209 = vmatprep.subr.bf16.mxu0 %v1230_v3  ;;  %v58_v18 = vsel %vm55_vm3, %v56_v4, %v57_v6 }
   0x5   :  { %456 = vst [vmem:[#allocation3 + $0x2f] sm:$0x1] %v1232_v10  ;;  %457 = vst [vmem:[#allocation3 + $0x5f] sm:$0x1] %v1232_v10  ;;  %v1191_v17 = vld [vmem:[%s1622_s1 + $0x8] sm:$0xff]   ;;  %v1192_v20 = vld [vmem:[%s1622_s1 + $0x10] sm:$0xff]  }
   0x6   :  { %88 = vst.msk [vmem:[#allocation2 + $0x18] sm:$0x7f] %vm87_vm1, %v77_v7  ;;  %90 = vst.msk [vmem:[#allocation2 + $0x38] sm:$0x7f] %vm87_vm1, %v80_v14  ;;  %v81_v16 = vsel %vm75_vm0, %v79_v12, %v80_v14  ;;  %40 = vrot.lane.b32.xlu0 %v31_v1, %s1231_s11  ;;  %44 = vrot.lane.b32.xlu1 %v33_v8, %s1231_s11  ;;  %v61_v19 = vsel %vm55_vm3, %v59_v11, %v60_v13  ;;  %v1193_v21 = vld [vmem:[%s1622_s1 + $0x18] sm:$0xff]   ;;  %v1233_v22 = vmov 0.0|0.0  }
   0x7   :  { %89 = vst.msk [vmem:[#allocation2 + $0x28] sm:$0xff] %vm68_vm4, %v81_v16  ;;  %86 = vst.msk [vmem:[#allocation2 + $0x8] sm:$0xff] %vm68_vm4, %v78_v15  ;;  %210 = vmatpush1.bf16.msra.mxu0 %v1191_v17  ;;  %1136 = vmatprep.subr.bf16.mxu1 %v1233_v22  ;;  %v1194_v24 = vld [vmem:[%s1622_s1 + $0x20] sm:$0xff]   ;;  %v280_v28 = vld [vmem:[%s1623_s3 + $0x8] sm:$0xff]  ;;  %vm50_vm5 = vcmask 1048064   ;;  %vm66_vm6 = vcmask 523265  }
   0x8   :  { %211 = vmatprep.subr.bf16.mxu0 %v1230_v3  ;;  %v279_v27 = vld [vmem:[%s1623_s3] sm:$0xff]  ;;  %v1195_v30 = vld [vmem:[%s1622_s1 + $0x28] sm:$0xff]   ;;  %v1196_v31 = vld [vmem:[%s1622_s1 + $0x30] sm:$0xff]   ;;  %vm1234_vm7 = vmmov 0  }
   0x9   :  { %v1350_v29 = vpack.c.bf16 %v280_v28, %v279_v27  ;;  %v1197_v32 = vld [vmem:[%s1622_s1 + $0x38] sm:$0xff]   ;;  %v1198_v33 = vld [vmem:[%s1622_s1 + $0x40] sm:$0xff]   ;;  %v1199_v34 = vld [vmem:[%s1622_s1 + $0x48] sm:$0xff]   ;;  %1078 = vmatprep.mubr.msk.f32.mxu1 %vm1234_vm7, %v1232_v10 }
   0xa   :  { %v1200_v35 = vld [vmem:[%s1622_s1 + $0x50] sm:$0xff]   ;;  %v1201_v36 = vld [vmem:[%s1622_s1 + $0x58] sm:$0xff]   ;;  %v283_v53 = vld [vmem:[%s1623_s3 + $0x20] sm:$0xff] }
   0xb   :  { %212 = vmatpush1.bf16.msra.mxu0 %v1192_v20  ;;  %1138 = vmatpush3.bf16.msra.mxu1 %v1350_v29  ;;  %v281_v50 = vld [vmem:[%s1623_s3 + $0x10] sm:$0xff]  ;;  %v282_v51 = vld [vmem:[%s1623_s3 + $0x18] sm:$0xff]  ;;  %v284_v54 = vld [vmem:[%s1623_s3 + $0x28] sm:$0xff] }
   0xc   :  { %213 = vmatprep.subr.bf16.mxu0 %v1230_v3  ;;  %1139 = vmatprep.subr.bf16.mxu1 %v1233_v22  ;;  %v1400_v52 = vpack.c.bf16 %v282_v51, %v281_v50  ;;  %v1410_v55 = vpack.c.bf16 %v284_v54, %v283_v53  ;;  %v285_v56 = vld [vmem:[%s1623_s3 + $0x30] sm:$0xff]  ;;  %v286_v57 = vld [vmem:[%s1623_s3 + $0x38] sm:$0xff]  ;;  %v287_v59 = vld [vmem:[%s1623_s3 + $0x40] sm:$0xff] }
   0xd   :  { %v96_v25 = vld [vmem:[#allocation2 + $0x18] sm:$0xff]  ;;  %v1420_v58 = vpack.c.bf16 %v286_v57, %v285_v56  ;;  %v288_v60 = vld [vmem:[%s1623_s3 + $0x48] sm:$0xff]  ;;  %v289_v62 = vld [vmem:[%s1623_s3 + $0x50] sm:$0xff] }
   0xe   :  { %v94_v23 = vld [vmem:[#allocation2 + $0x8] sm:$0xff]  ;;  %v100_v42 = vld [vmem:[#allocation2 + $0x38] sm:$0xff]  ;;  %v1430_v61 = vpack.c.bf16 %v288_v60, %v287_v59  ;;  %v291_v1 = vld [vmem:[%s1623_s3 + $0x60] sm:$0xff] }
   0xf   :  { %214 = vmatpush1.bf16.msra.mxu0 %v1193_v21  ;;  %v102_v26 = vpack.c.bf16 %v96_v25, %v94_v23  ;;  %v98_v41 = vld [vmem:[#allocation2 + $0x28] sm:$0xff]  ;;  %1141 = vmatpush3.bf16.msra.mxu1 %v1400_v52  ;;  %v290_v63 = vld [vmem:[%s1623_s3 + $0x58] sm:$0xff]  ;;  %v1214_v54 = vld [vmem:[%s1624_s2 + $0x60] sm:$0xff]  }
  0x10   :  { %215 = vmatprep.subr.bf16.mxu0 %v1230_v3  ;;  %v104_v45 = vpack.c.bf16 %v100_v42, %v98_v41  ;;  %1142 = vmatprep.subr.bf16.mxu1 %v1233_v22  ;;  %v1440_v0 = vpack.c.bf16 %v290_v63, %v289_v62  ;;  %v292_v2 = vld [vmem:[%s1623_s3 + $0x68] sm:$0xff]  ;;  %v294_v5 = vld [vmem:[%s1623_s3 + $0x78] sm:$0xff]  ;;  %v1202_v41 = vld [vmem:[%s1624_s2 + $0x40] sm:$0xff]  }
  0x11   :  { %948 = vmatprep.mubr.msk.bf16.mxu0 %vm68_vm4, %v102_v26  ;;  %v1203_v42 = vld [vmem:[%s1624_s2] sm:$0xff]   ;;  %v1211_v50 = vld [vmem:[%s1624_s2 + $0x58] sm:$0xff]   ;;  %v1217_v59 = vld [vmem:[%s1624_s2 + $0x68] sm:$0xff]  }
  0x12   :  { %v1212_v51 = vld [vmem:[%s1624_s2 + $0x18] sm:$0xff]   ;;  %v1215_v56 = vld [vmem:[%s1624_s2 + $0x20] sm:$0xff]   ;;  %v1218_v60 = vld [vmem:[%s1624_s2 + $0x28] sm:$0xff]  }
  0x13   :  { %216 = vmatpush1.bf16.msra.mxu0 %v1194_v24  ;;  %1144 = vmatpush3.bf16.msra.mxu1 %v1410_v55  ;;  %v1213_v53 = vld [vmem:[%s1624_s2 + $0x98] sm:$0xff]   ;;  %v1216_v57 = vld [vmem:[%s1624_s2 + $0xa0] sm:$0xff]   ;;  %v1219_v62 = vld [vmem:[%s1624_s2 + $0xa8] sm:$0xff]  }
  0x14   :  { %217 = vmatprep.subr.bf16.mxu0 %v1230_v3  ;;  %1145 = vmatprep.subr.bf16.mxu1 %v1233_v22  ;;  %v1220_v63 = vld [vmem:[%s1624_s2 + $0x70] sm:$0xff]  }
  0x17   :  { %218 = vmatpush1.bf16.msra.mxu0 %v1195_v30  ;;  %1147 = vmatpush3.bf16.msra.mxu1 %v1420_v58 }
  0x18   :  { %219 = vmatprep.subr.bf16.mxu0 %v1230_v3  ;;  %1148 = vmatprep.subr.bf16.mxu1 %v1233_v22 }
  0x1b   :  { %220 = vmatpush1.bf16.msra.mxu0 %v1196_v31  ;;  %1150 = vmatpush3.bf16.msra.mxu1 %v1430_v61 }
  0x1c   :  { %221 = vmatprep.subr.bf16.mxu0 %v1230_v3  ;;  %1151 = vmatprep.subr.bf16.mxu1 %v1233_v22 }
  0x1f   :  { %222 = vmatpush1.bf16.msra.mxu0 %v1197_v32  ;;  %1153 = vmatpush3.bf16.msra.mxu1 %v1440_v0 }
  0x20   :  { %223 = vmatprep.subr.bf16.mxu0 %v1230_v3  ;;  %1154 = vmatprep.subr.bf16.mxu1 %v1233_v22 }
  0x23   :  { %224 = vmatpush1.bf16.msra.mxu0 %v1198_v33 }
  0x24   :  { %225 = vmatprep.subr.bf16.mxu0 %v1230_v3 }
  0x27   :  { %226 = vmatpush1.bf16.msra.mxu0 %v1199_v34 }
  0x28   :  { %227 = vmatprep.subr.bf16.mxu0 %v1230_v3 }
  0x2b   :  { %228 = vmatpush1.bf16.msra.mxu0 %v1200_v35 }
  0x2c   :  { %229 = vmatprep.subr.bf16.mxu0 %v1230_v3  ;;  %v1450_v3 = vpack.c.bf16 %v292_v2, %v291_v1  ;;  %v1221_v1 = vld [vmem:[%s1624_s2 + $0x30] sm:$0xff]  }
  0x2d   :  { %v1222_v2 = vld [vmem:[%s1624_s2 + $0xb0] sm:$0xff]  }
  0x2e   :  { %1156 = vmatpush3.bf16.msra.mxu1 %v1450_v3 }
  0x2f   :  { %230 = vmatpush1.bf16.msra.mxu0 %v1201_v36  ;;  %1157 = vmatprep.subr.bf16.mxu1 %v1233_v22 }
  0x74   :  { %v39_v37 = vpop.permute.xlu0 %38  ;;  %v43_v38 = vpop.permute.xlu1 %42 }
  0x75   :  { %51 = vst.msk [vmem:[#allocation2] sm:$0xff] %vm50_vm5, %v39_v37  ;;  %53 = vst.msk [vmem:[#allocation2 + $0x20] sm:$0xff] %vm50_vm5, %v43_v38 }
  0x76   :  { %67 = vst.msk [vmem:[#allocation2] sm:$0xfe] %vm66_vm6, %v56_v4  ;;  %70 = vst.msk [vmem:[#allocation2 + $0x20] sm:$0xfe] %vm66_vm6, %v59_v11  ;;  %v293_v4 = vld [vmem:[%s1623_s3 + $0x70] sm:$0xff] }
  0x77   :  { %73 = vst.msk [vmem:[#allocation2] sm:$0x1] %vm72_vm2, %v1232_v10  ;;  %74 = vst.msk [vmem:[#allocation2 + $0x20] sm:$0x1] %vm72_vm2, %v1232_v10  ;;  %v1461_v6 = vpack.c.bf16 %v294_v5, %v293_v4  ;;  %v1223_v4 = vld [vmem:[%s1624_s2 + $0x78] sm:$0xff]  }
  0x78   :  { %v41_v39 = vpop.permute.xlu0 %40  ;;  %v45_v40 = vpop.permute.xlu1 %44  ;;  %v1225_v5 = vld [vmem:[%s1624_s2 + $0xb8] sm:$0xff]  }
  0x79   :  { %52 = vst.msk [vmem:[#allocation2 + $0x10] sm:$0xff] %vm50_vm5, %v41_v39  ;;  %54 = vst.msk [vmem:[#allocation2 + $0x30] sm:$0xff] %vm50_vm5, %v45_v40  ;;  %1159 = vmatpush3.bf16.msra.mxu1 %v1461_v6 }
  0x7a   :  { %69 = vst.msk [vmem:[#allocation2 + $0x10] sm:$0xff] %vm68_vm4, %v58_v18  ;;  %71 = vst.msk [vmem:[#allocation2 + $0x30] sm:$0xff] %vm68_vm4, %v61_v19  ;;  %991 = vmatprep.subr.bf16.mxu1 %v1202_v41 }
  0x7e   :  { %v93_v43 = vld [vmem:[#allocation2] sm:$0xff] }
  0x7f   :  { %v97_v47 = vld [vmem:[#allocation2 + $0x20] sm:$0xff] }
  0x81   :  { %v95_v44 = vld [vmem:[#allocation2 + $0x10] sm:$0xff] }
  0x82   :  { %v101_v46 = vpack.c.bf16 %v95_v44, %v93_v43  ;;  %v99_v48 = vld [vmem:[#allocation2 + $0x30] sm:$0xff]  ;;  %v1204_v43 = vld [vmem:[%s1624_s2 + $0x80] sm:$0xff]   ;;  %v1205_v44 = vld [vmem:[%s1624_s2 + $0x48] sm:$0xff]  }
  0x83   :  { %v103_v49 = vpack.c.bf16 %v99_v48, %v97_v47  ;;  %1081 = vmatprep.subr.bf16.mxu0 %v1204_v43  ;;  %v1208_v47 = vld [vmem:[%s1624_s2 + $0x50] sm:$0xff]  }
  0x84   :  { %240 = vmatmul.mubr.bf16.vlgmr.msra.gmra.mrb[0].mxu0 %v101_v46  ;;  %v1207_v46 = vld [vmem:[%s1624_s2 + $0x88] sm:$0xff]   ;;  %v1209_v48 = vld [vmem:[%s1624_s2 + $0x10] sm:$0xff]  }
  0x85   :  { %949 = vmatprep.mubr.msk.bf16.mxu0 %vm68_vm4, %v104_v45  ;;  %1082 = vmatpush3.bf16.msra.mxu0 %v1204_v43  ;;  %v1206_v45 = vld [vmem:[%s1624_s2 + $0x8] sm:$0xff]  }
  0x86   :  { %1083 = vmatprep.subr.bf16.mxu0 %v1207_v46 }
  0x89   :  { %1084 = vmatpush3.bf16.msra.mxu0 %v1207_v46 }
  0x8c   :  { %248 = vmatmul.mubr.bf16.gmra.mrb[4].mxu0 %v103_v49  ;;  %v1210_v49 = vld [vmem:[%s1624_s2 + $0x90] sm:$0xff]  }
  0x8d   :  { %1085 = vmatprep.subr.bf16.mxu0 %v1210_v49 }
  0x8e   :  { %1086 = vmatpush3.bf16.msra.mxu0 %v1210_v49 }
  0x8f   :  { %1087 = vmatprep.subr.bf16.mxu0 %v1213_v53 }
  0x92   :  { %1088 = vmatpush3.bf16.msra.mxu0 %v1213_v53 }
  0x93   :  { %1089 = vmatprep.subr.bf16.mxu0 %v1216_v57 }
  0x96   :  { %1090 = vmatpush3.bf16.msra.mxu0 %v1216_v57 }
  0x97   :  { %1091 = vmatprep.subr.bf16.mxu0 %v1219_v62 }
  0x9a   :  { %1092 = vmatpush3.bf16.msra.mxu0 %v1219_v62 }
  0x9b   :  { %1093 = vmatprep.subr.bf16.mxu0 %v1222_v2 }
  0x9e   :  { %1094 = vmatpush3.bf16.msra.mxu0 %v1222_v2 }
  0x9f   :  { %1095 = vmatprep.subr.bf16.mxu0 %v1225_v5 }
  0xa2   :  { %1096 = vmatpush3.bf16.msra.mxu0 %v1225_v5 }
 0x157   :  { %v1465_v7 = vpop.f32.mrb[0].mxu0 }
 0x158   :  { %v243_v8 = vpop.f32.mrb[1].mxu0  ;;  %v265_v11 = vmul.f32 %v1465_v7, %v1465_v7 }
 0x159   :  { %v1467_v9 = vpop.f32.mrb[2].mxu0  ;;  %v1224_v8 = vld [vmem:[%s1624_s2 + $0x38] sm:$0xff]  }
 0x15a   :  { %v256_v12 = vadd.f32 %v1467_v9, %v1465_v7  ;;  %v266_v13 = vmul.f32 %v1467_v9, %v1467_v9  ;;  %v246_v14 = vpop.f32.mrb[3].mxu0 }
 0x15c   :  { %v269_v15 = vadd.f32 %v266_v13, %v265_v11 }
 0x15f   :  { %v1475_v16 = vpop.f32.mrb[4].mxu0 }
 0x160   :  { %v257_v17 = vadd.f32 %v256_v12, %v1475_v16  ;;  %v267_v18 = vmul.f32 %v1475_v16, %v1475_v16  ;;  %v251_v19 = vpop.f32.mrb[5].mxu0 }
 0x161   :  { %v1480_v20 = vpop.f32.mrb[6].mxu0 }
 0x162   :  { %v270_v21 = vadd.f32 %v269_v15, %v267_v18  ;;  %v258_v23 = vadd.f32 %v257_v17, %v1480_v20  ;;  %v268_v24 = vmul.f32 %v1480_v20, %v1480_v20  ;;  %v254_v25 = vpop.f32.mrb[7].mxu0  ;;  %v1235_v18 = vmov 1966171168  }
 0x163   :  { %v375_v19 = vunpack.c.l.s4 %v1235_v18 }
 0x164   :  { %v259_v26 = vrot.slane %v258_v23, 4  ;;  %v271_v27 = vadd.f32 %v270_v21, %v268_v24  ;;  %v377_v21 = vlaneseq }
 0x166   :  { %v260_v28 = vadd.f32 %v259_v26, %v258_v23  ;;  %v272_v30 = vrot.slane %v271_v27, 4  ;;  %v376_v23 = vunpack.c.0.s8 %v375_v19  ;;  %v378_v24 = vshrl.u32 %v377_v21, 7 }
 0x168   :  { %v261_v31 = vrot.slane %v260_v28, 2  ;;  %v273_v32 = vadd.f32 %v272_v30, %v271_v27  ;;  %v1559_v25 = vsub.s32 %v376_v23, %v378_v24  ;;  %v370_v30 = vld [vmem:[%s1625_s4] sm:$0x1] }
 0x16a   :  { %v262_v33 = vadd.f32 %v261_v31, %v260_v28  ;;  %v274_v34 = vrot.slane %v273_v32, 2 }
 0x16c   :  { %v263_v35 = vrot.slane %v262_v33, 1  ;;  %v275_v36 = vadd.f32 %v274_v34, %v273_v32  ;;  %v1566_v32 = vsub.s32 0, %v378_v24  ;;  %v391_v34 = vld [vmem:[%s1626_s5] sm:$0x1] }
 0x16e   :  { %v276_v37 = vrot.slane %v275_v36, 1  ;;  %v264_v38 = vadd.f32 %v263_v35, %v262_v33 }
 0x170   :  { %v277_v39 = vadd.f32 %v276_v37, %v275_v36 }
 0x172   :  { %v278_v40 = vsel %vm55_vm3, %v264_v38, %v277_v39 }
 0x173   :  { %1079 = vmatmul.mubr.f32.vlgmr.msra.gmra.mrb[0].mxu1 %v278_v40 }
 0x174   :  { %992 = vmatpush3.bf16.msra.mxu1 %v1203_v42 }
 0x175   :  { %993 = vmatprep.subr.bf16.mxu1 %v1205_v44 }
 0x178   :  { %994 = vmatpush3.bf16.msra.mxu1 %v1206_v45 }
 0x179   :  { %995 = vmatprep.subr.bf16.mxu1 %v1208_v47 }
 0x17c   :  { %996 = vmatpush3.bf16.msra.mxu1 %v1209_v48 }
 0x17d   :  { %997 = vmatprep.subr.bf16.mxu1 %v1211_v50 }
 0x180   :  { %998 = vmatpush3.bf16.msra.mxu1 %v1212_v51 }
 0x181   :  { %999 = vmatprep.subr.bf16.mxu1 %v1214_v54 }
 0x184   :  { %1000 = vmatpush3.bf16.msra.mxu1 %v1215_v56 }
 0x185   :  { %1001 = vmatprep.subr.bf16.mxu1 %v1217_v59 }
 0x188   :  { %1002 = vmatpush3.bf16.msra.mxu1 %v1218_v60 }
 0x189   :  { %1003 = vmatprep.subr.bf16.mxu1 %v1220_v63 }
 0x18c   :  { %1004 = vmatpush3.bf16.msra.mxu1 %v1221_v1 }
 0x18d   :  { %1005 = vmatprep.subr.bf16.mxu1 %v1223_v4 }
 0x190   :  { %1006 = vmatpush3.bf16.msra.mxu1 %v1224_v8 }
 0x191   :  { %1160 = vmatprep.subr.bf16.mxu1 %v1233_v22 }
 0x246   :  { %v361_v11 = vpop.f32.mrb[0].mxu1 }
 0x247   :  { %v365_v12 = vmul.f32 %v361_v11, %v361_v11  ;;  %v1080_v13 = vpop.f32.mrb[1].mxu1 }
 0x249   :  { %v367_v14 = vrot.slane %v365_v12, 7 }
 0x24b   :  { %v369_v15 = vsub.f32 %v361_v11, %v367_v14 }
 0x24d   :  { %v371_v17 = vadd.f32 1e-05, %v369_v15 }
 0x24f   :  { %1226 = vrsqrt.f32 %v371_v17 }
 0x259   :  { %v1227_v26 = vpop.eup %1226 }
 0x25a   :  { %v380_v27 = vrot.slane %v1227_v26, %v1559_v25 }
 0x25c   :  { %v381_v28 = vcombine.high %v380_v27, %v380_v27 }
 0x25e   :  { %v388_v31 = vrot.slane %v381_v28, %v1559_v25 }
 0x260   :  { %v390_v33 = vmul.f32 %v388_v31, %v370_v30 }
 0x262   :  { %v392_v35 = vmul.f32 %v390_v33, %v361_v11  ;;  %v398_v36 = vrot.slane %v390_v33, %v1566_v32 }
 0x264   :  { %v393_v37 = vsub.f32 %v391_v34, %v392_v35  ;;  %v400_v38 = vmul.f32 %v398_v36, %v1465_v7  ;;  %v401_v39 = vmul.f32 %v398_v36, %v1467_v9  ;;  %v402_v40 = vmul.f32 %v398_v36, %v1475_v16 }
 0x265   :  { %v403_v41 = vmul.f32 %v398_v36, %v1480_v20 }
 0x266   :  { %v408_v42 = vrot.slane %v393_v37, %v1566_v32 }
 0x268   :  { %v410_v43 = vadd.f32 %v408_v42, %v400_v38  ;;  %v411_v44 = vadd.f32 %v408_v42, %v401_v39  ;;  %v412_v45 = vadd.f32 %v408_v42, %v402_v40  ;;  %v413_v46 = vadd.f32 %v408_v42, %v403_v41 }
 0x26a   :  { %v414_v47 = vmax.f32 %v410_v43, 0.0  ;;  %v415_v48 = vmax.f32 %v411_v44, 0.0  ;;  %v416_v49 = vmax.f32 %v412_v45, 0.0  ;;  %v417_v50 = vmax.f32 %v413_v46, 0.0 }
 0x26c   :  { %v426_v51 = vrot.slane %v414_v47, 7  ;;  %v427_v53 = vrot.slane %v415_v48, 7  ;;  %v429_v54 = vrot.slane %v416_v49, 7  ;;  %v430_v7 = vrot.slane %v417_v50, 7 }
 0x26d   :  { %v442_v56 = vrot.slane %v414_v47, 1  ;;  %v443_v9 = vrot.slane %v415_v48, 1  ;;  %v445_v57 = vrot.slane %v416_v49, 1  ;;  %v446_v16 = vrot.slane %v417_v50, 1 }
 0x26e   :  { %v428_v20 = vsel %vm55_vm3, %v426_v51, %v427_v53  ;;  %v431_v59 = vsel %vm55_vm3, %v429_v54, %v430_v7  ;;  %436 = vst [vmem:[#allocation3] sm:$0xfe] %v426_v51  ;;  %438 = vst [vmem:[#allocation3 + $0x30] sm:$0xfe] %v429_v54  ;;  %v471_v60 = vpack.c.bf16 %v415_v48, %v414_v47 }
 0x26f   :  { %v474_v62 = vpack.c.bf16 %v417_v50, %v416_v49  ;;  %v444_v63 = vsel %vm75_vm0, %v442_v56, %v443_v9  ;;  %v447_v1 = vsel %vm75_vm0, %v445_v57, %v446_v16  ;;  %453 = vst [vmem:[#allocation3 + $0x28] sm:$0x7f] %v443_v9  ;;  %455 = vst [vmem:[#allocation3 + $0x58] sm:$0x7f] %v446_v16 }
 0x270   :  { %700 = vmatprep.mubr.bf16.mxu1 %v471_v60 }
 0x275   :  { %v458_v2 = vld [vmem:[#allocation3] sm:$0xff]  ;;  %v464_v13 = vld [vmem:[#allocation3 + $0x30] sm:$0xff] }
 0x276   :  { %v470_v4 = vpack.c.bf16 %v428_v20, %v458_v2  ;;  %v463_v5 = vld [vmem:[#allocation3 + $0x28] sm:$0xff]  ;;  %v469_v8 = vld [vmem:[#allocation3 + $0x58] sm:$0xff]  ;;  %v473_v14 = vpack.c.bf16 %v431_v59, %v464_v13 }
 0x277   :  { %v472_v11 = vpack.c.bf16 %v463_v5, %v444_v63  ;;  %v475_v12 = vpack.c.bf16 %v469_v8, %v447_v1  ;;  %v880_v63 = vld [vmem:[%s1627_s6] sm:$0x1] }
 0x278   :  { %701 = vmatmul.mubr.bf16.vlgmr.msra.gmra.mrb[4].mxu1 %v470_v4  ;;  %v901_v4 = vld [vmem:[%s1628_s7] sm:$0x1] }
 0x279   :  { %1097 = vmatprep.mubr.bf16.mxu0 %v472_v11  ;;  %708 = vmatprep.mubr.bf16.mxu1 %v474_v62 }
 0x27a   :  { %1098 = vmatmul.mubr.bf16.vlgmr.msra.gmra.mrb[8].mxu0 %v475_v12  ;;  %1162 = vmatpush3.bf16.msra.mxu1 %v1350_v29 }
 0x27b   :  { %1163 = vmatprep.subr.bf16.mxu1 %v1233_v22 }
 0x27e   :  { %1165 = vmatpush3.bf16.msra.mxu1 %v1400_v52 }
 0x27f   :  { %1166 = vmatprep.subr.bf16.mxu1 %v1233_v22 }
 0x280   :  { %709 = vmatmul.mubr.bf16.gmra.mrb[8].mxu1 %v473_v14 }
 0x281   :  { %1133 = vmatprep.mubr.msk.f32.mxu1 %vm1234_vm7, %v1232_v10 }
 0x282   :  { %1168 = vmatpush3.bf16.msra.mxu1 %v1410_v55 }
 0x283   :  { %1169 = vmatprep.subr.bf16.mxu1 %v1233_v22 }
 0x286   :  { %1171 = vmatpush3.bf16.msra.mxu1 %v1420_v58 }
 0x287   :  { %1172 = vmatprep.subr.bf16.mxu1 %v1233_v22 }
 0x28a   :  { %1174 = vmatpush3.bf16.msra.mxu1 %v1430_v61 }
 0x28b   :  { %1175 = vmatprep.subr.bf16.mxu1 %v1233_v22 }
 0x28e   :  { %1177 = vmatpush3.bf16.msra.mxu1 %v1440_v0 }
 0x28f   :  { %1178 = vmatprep.subr.bf16.mxu1 %v1233_v22 }
 0x292   :  { %1180 = vmatpush3.bf16.msra.mxu1 %v1450_v3 }
 0x293   :  { %1181 = vmatprep.subr.bf16.mxu1 %v1233_v22 }
 0x296   :  { %1183 = vmatpush3.bf16.msra.mxu1 %v1461_v6 }
 0x34b   :  { %v1007_v10 = vpop.f32.mrb[4].mxu1 }
 0x34c   :  { %v1008_v29 = vpop.f32.mrb[5].mxu1 }
 0x34d   :  { %v1009_v52 = vadd.f32 %v1008_v29, %v1007_v10  ;;  %v1099_v55 = vpop.f32.mrb[8].mxu0  ;;  %v1010_v58 = vpop.f32.mrb[6].mxu1 }
 0x34e   :  { %v751_v15 = vpop.f32.mrb[9].mxu0  ;;  %v1011_v17 = vpop.f32.mrb[7].mxu1 }
 0x34f   :  { %v752_v61 = vadd.f32 %v1009_v52, %v751_v15  ;;  %v1012_v18 = vadd.f32 %v1011_v17, %v1010_v58  ;;  %v1100_v19 = vpop.f32.mrb[10].mxu0 }
 0x350   :  { %v754_v21 = vpop.f32.mrb[11].mxu0 }
 0x351   :  { %v755_v0 = vadd.f32 %v1012_v18, %v754_v21  ;;  %v775_v28 = vmul.f32 %v752_v61, %v752_v61 }
 0x353   :  { %v1013_v23 = vpop.f32.mrb[8].mxu1  ;;  %v776_v26 = vmul.f32 %v755_v0, %v755_v0  ;;  %v766_v6 = vadd.f32 %v755_v0, %v752_v61 }
 0x354   :  { %v1014_v24 = vpop.f32.mrb[9].mxu1 }
 0x355   :  { %v1015_v3 = vadd.f32 %v1014_v24, %v1013_v23  ;;  %v1016_v27 = vpop.f32.mrb[10].mxu1  ;;  %v779_v33 = vadd.f32 %v776_v26, %v775_v28 }
 0x356   :  { %v1017_v22 = vpop.f32.mrb[11].mxu1 }
 0x357   :  { %v760_v30 = vadd.f32 %v1099_v55, %v1015_v3  ;;  %v1018_v31 = vadd.f32 %v1017_v22, %v1016_v27 }
 0x359   :  { %v767_v34 = vadd.f32 %v766_v6, %v760_v30  ;;  %v777_v35 = vmul.f32 %v760_v30, %v760_v30  ;;  %v763_v36 = vadd.f32 %v1100_v19, %v1018_v31 }
 0x35b   :  { %v780_v37 = vadd.f32 %v779_v33, %v777_v35  ;;  %v768_v38 = vadd.f32 %v767_v34, %v763_v36  ;;  %v778_v39 = vmul.f32 %v763_v36, %v763_v36 }
 0x35d   :  { %v769_v40 = vrot.slane %v768_v38, 4  ;;  %v781_v41 = vadd.f32 %v780_v37, %v778_v39 }
 0x35f   :  { %v770_v42 = vadd.f32 %v769_v40, %v768_v38  ;;  %v782_v43 = vrot.slane %v781_v41, 4 }
 0x361   :  { %v771_v44 = vrot.slane %v770_v42, 2  ;;  %v783_v45 = vadd.f32 %v782_v43, %v781_v41 }
 0x363   :  { %v772_v46 = vadd.f32 %v771_v44, %v770_v42  ;;  %v784_v47 = vrot.slane %v783_v45, 2 }
 0x365   :  { %v773_v48 = vrot.slane %v772_v46, 1  ;;  %v785_v49 = vadd.f32 %v784_v47, %v783_v45 }
 0x367   :  { %v786_v50 = vrot.slane %v785_v49, 1  ;;  %v774_v51 = vadd.f32 %v773_v48, %v772_v46 }
 0x369   :  { %v787_v53 = vadd.f32 %v786_v50, %v785_v49 }
 0x36b   :  { %v788_v54 = vsel %vm55_vm3, %v774_v51, %v787_v53 }
 0x36c   :  { %1134 = vmatmul.mubr.f32.vlgmr.msra.gmra.mrb[2].mxu1 %v788_v54 }
 0x43f   :  { %v871_v7 = vpop.f32.mrb[2].mxu1 }
 0x440   :  { %v875_v56 = vmul.f32 %v871_v7, %v871_v7  ;;  %v1135_v9 = vpop.f32.mrb[3].mxu1 }
 0x442   :  { %v877_v57 = vrot.slane %v875_v56, 7 }
 0x444   :  { %v879_v16 = vsub.f32 %v871_v7, %v877_v57 }
 0x446   :  { %v881_v20 = vadd.f32 1e-05, %v879_v16 }
 0x448   :  { %1228 = vrsqrt.f32 %v881_v20 }
 0x452   :  { %v1229_v59 = vpop.eup %1228 }
 0x453   :  { %v890_v60 = vrot.slane %v1229_v59, %v1559_v25 }
 0x455   :  { %v891_v62 = vcombine.high %v890_v60, %v890_v60 }
 0x457   :  { %v898_v1 = vrot.slane %v891_v62, %v1559_v25 }
 0x459   :  { %v900_v2 = vmul.f32 %v898_v1, %v880_v63 }
 0x45b   :  { %v902_v5 = vmul.f32 %v900_v2, %v871_v7  ;;  %v908_v8 = vrot.slane %v900_v2, %v1566_v32 }
 0x45d   :  { %v903_v11 = vsub.f32 %v901_v4, %v902_v5  ;;  %v910_v12 = vmul.f32 %v908_v8, %v752_v61  ;;  %v911_v13 = vmul.f32 %v908_v8, %v755_v0  ;;  %v912_v14 = vmul.f32 %v908_v8, %v760_v30 }
 0x45e   :  { %v913_v10 = vmul.f32 %v908_v8, %v763_v36 }
 0x45f   :  { %v918_v29 = vrot.slane %v903_v11, %v1566_v32 }
 0x461   :  { %v920_v52 = vadd.f32 %v918_v29, %v910_v12  ;;  %v921_v55 = vadd.f32 %v918_v29, %v911_v13  ;;  %v922_v58 = vadd.f32 %v918_v29, %v912_v14  ;;  %v923_v15 = vadd.f32 %v918_v29, %v913_v10 }
 0x463   :  { %v924_v25 = vmax.f32 %v920_v52, 0.0  ;;  %v925_v17 = vmax.f32 %v921_v55, 0.0  ;;  %v926_v18 = vmax.f32 %v922_v58, 0.0  ;;  %v927_v19 = vmax.f32 %v923_v15, 0.0 }
 0x465   :  { %928 = vst [vmem:[%s1629_s8] sm:$0xff] %v924_v25  ;;  %929 = vst [vmem:[%s1629_s8 + $0x8] sm:$0xff] %v925_v17 }
 0x466   :  { %930 = vst [vmem:[%s1629_s8 + $0x10] sm:$0xff] %v926_v18  ;;  %931 = vst [vmem:[%s1629_s8 + $0x18] sm:$0xff] %v927_v19 }

</bundles_post_ra>
